<compile_context>
chip_gen: v5e
topology: v5e:2x2
jax: 0.10.0
libtpu: 0.0.40
codegen_flags: <defaults>
</compile_context>

<pallas_src>
import jax
import jax.numpy as jnp
from jax.experimental import pallas as pl
from jax.experimental.pallas import tpu as pltpu


_LANE = 128
_ROW_MODE_MIN_BYTES = 512 * 1024  # a single padded (C, D) row this big is already a large DMA


def _roundup(x: int, m: int) -> int:
    return ((x + m - 1) // m) * m


def _sublane_multiple(dtype) -> int:
    # rows per (sublane, lane) tile: 8 for 4-byte, 16 for 2-byte, 32 for 1-byte dtypes
    return max(8, 32 // jnp.dtype(dtype).itemsize)


def _default_target_block_bytes() -> int:
    # v5e/v6e: 128 MiB VMEM -> big streaming blocks; v7x: 64 MiB -> keep blocks modest.
    try:
        vmem = int(getattr(pltpu.get_tpu_info(), "vmem_capacity_bytes", 64 << 20))
    except Exception:  # never let a HW query break the wrapper
        vmem = 64 << 20
    return (8 << 20) if vmem >= (96 << 20) else (3 << 20)


def _vmem_limit_bytes(buffer_bytes: int, extra_bytes: int) -> int:
    # double-buffered pipeline buffers + in-kernel temporaries + compiler headroom
    limit = 2 * buffer_bytes + extra_bytes + (8 << 20)
    return int(min(max(limit, 32 << 20), 100 << 20))


# ----------------------------------------------------------------------------- kernels


def _block_mode_kernel(news_ref, user_ref, out_ref):
    # news_ref: (bblk, C, D), user_ref: (bblk, D), out_ref: (bblk, C)
    news = news_ref[...]
    user = user_ref[...]
    # VPU multiply in the input dtype (no f32 copy of the block) + f32-accumulating
    # last-axis reduce on the XLU; fully hidden under the HBM stream at 2 flops/element.
    prod = news * user[:, None, :]
    out_ref[...] = jnp.sum(prod, axis=-1, dtype=jnp.float32).astype(out_ref.dtype)


def _row_mode_kernel(news_ref, user_ref, out_ref):
    # news_ref: (1, cblk, D), user_ref: (1, 1, D), out_ref: (1, 1, cblk)
    news = news_ref[0]      # (cblk, D)
    user = user_ref[0]      # (1, D)
    # MXU contraction (q @ k^T pattern): (1, D) x (cblk, D)^T -> lane-dense (1, cblk),
    # f32 accumulation, no product temporary.
    scores = jax.lax.dot_general(
        user, news,
        dimension_numbers=(((1,), (1,)), ((), ())),
        preferred_element_type=jnp.float32,
    )
    out_ref[0] = scores.astype(out_ref.dtype)


# ----------------------------------------------------------------------------- wrappers


def _forward_block_mode(news_vector, user_vector, target_block_bytes):
    B, C, D = news_vector.shape
    dtype = news_vector.dtype
    itemsize = jnp.dtype(dtype).itemsize
    sub = _sublane_multiple(dtype)
    d_pad = _roundup(D, _LANE)
    row_bytes = _roundup(C, sub) * d_pad * itemsize   # padded VMEM bytes of one batch row

    bblk = max(1, target_block_bytes // row_bytes)
    if B <= 8:
        # a 2-D (bblk, D) block needs bblk % 8 == 0 or bblk == B; can't split further
        bblk = B
    else:
        bblk = min(bblk, (B + 1) // 2)        # >= 2 grid steps so both v7x TCs get work
        bblk = max(8, (bblk // 8) * 8)        # sublane-friendly second-to-last block dim

    grid = (pl.cdiv(B, bblk),)

    news_buf = bblk * _roundup(C, sub) * d_pad * itemsize
    user_buf = _roundup(bblk, sub) * d_pad * itemsize
    out_buf = _roundup(bblk, sub) * _roundup(C, _LANE) * itemsize
    prod_tmp = bblk * _roundup(C, sub) * d_pad * 4      # f32 accumulation temporary

    return pl.pallas_call(
        _block_mode_kernel,
        out_shape=jax.ShapeDtypeStruct((B, C), dtype),
        grid_spec=pltpu.PrefetchScalarGridSpec(
            num_scalar_prefetch=0,
            grid=grid,
            in_specs=[
                pl.BlockSpec((bblk, C, D), lambda b: (b, 0, 0)),
                pl.BlockSpec((bblk, D), lambda b: (b, 0)),
            ],
            out_specs=pl.BlockSpec((bblk, C), lambda b: (b, 0)),
        ),
        compiler_params=pltpu.CompilerParams(
            dimension_semantics=("parallel",),
            vmem_limit_bytes=_vmem_limit_bytes(news_buf + user_buf + out_buf, prod_tmp),
        ),
    )(news_vector, user_vector)


def _forward_row_mode(news_vector, user_vector, target_block_bytes):
    B, C, D = news_vector.shape
    dtype = news_vector.dtype
    itemsize = jnp.dtype(dtype).itemsize
    sub = _sublane_multiple(dtype)
    d_pad = _roundup(D, _LANE)
    row_bytes = _roundup(C, sub) * d_pad * itemsize

    if row_bytes > target_block_bytes and C > _LANE:
        # candidate tile: multiple of 128 -> legal block and lane-dense output stores
        cblk = (target_block_bytes // (d_pad * itemsize)) // _LANE * _LANE
        cblk = int(min(max(cblk, _LANE), (C // _LANE) * _LANE))
    else:
        cblk = C
    grid = (B, pl.cdiv(C, cblk))   # C innermost; user block's index_map ignores it

    news_buf = _roundup(cblk, sub) * d_pad * itemsize
    user_buf = sub * d_pad * itemsize
    out_buf = sub * _roundup(cblk, _LANE) * itemsize
    scores_tmp = 8 * _roundup(cblk, _LANE) * 4

    out = pl.pallas_call(
        _row_mode_kernel,
        out_shape=jax.ShapeDtypeStruct((B, 1, C), dtype),
        grid_spec=pltpu.PrefetchScalarGridSpec(
            num_scalar_prefetch=0,
            grid=grid,
            in_specs=[
                pl.BlockSpec((1, cblk, D), lambda b, c: (b, c, 0)),
                pl.BlockSpec((1, 1, D), lambda b, c: (b, 0, 0)),
            ],
            out_specs=pl.BlockSpec((1, 1, cblk), lambda b, c: (b, 0, c)),
        ),
        compiler_params=pltpu.CompilerParams(
            dimension_semantics=("parallel", "parallel"),
            vmem_limit_bytes=_vmem_limit_bytes(news_buf + user_buf + out_buf, scores_tmp),
        ),
    )(news_vector, user_vector.reshape(B, 1, D))
    return out.reshape(B, C)


def inner_product_click_predictor(news_vector: jax.Array,
                                  user_vector: jax.Array,
                                  *,
                                  target_block_bytes: int | None = None) -> jax.Array:
    """news_vector: (B, C, D), user_vector: (B, D) -> (B, C)."""
    B, C, D = news_vector.shape
    assert user_vector.shape == (B, D), (news_vector.shape, user_vector.shape)
    if target_block_bytes is None:
        target_block_bytes = _default_target_block_bytes()

    dtype = news_vector.dtype
    itemsize = jnp.dtype(dtype).itemsize
    row_bytes = _roundup(C, _sublane_multiple(dtype)) * _roundup(D, _LANE) * itemsize

    if row_bytes >= _ROW_MODE_MIN_BYTES:
        return _forward_row_mode(news_vector, user_vector, target_block_bytes)
    return _forward_block_mode(news_vector, user_vector, target_block_bytes)


# ----------------------------------------------------------------------------- tests


if __name__ == "__main__":
    key = jax.random.PRNGKey(0)
    k1, k2, k3, k4, k5, k6 = jax.random.split(key, 6)

    def reference(news, user):
        return jnp.einsum("bcd,bd->bc", news, user, precision=jax.lax.Precision.HIGHEST)

    # 1) Module-like small shapes (block mode, single grid step).
    b, c, d = 2, 8, 32
    news = jax.random.normal(k1, (b, c, d), dtype=jnp.float32)
    user = jax.random.normal(k2, (b, d), dtype=jnp.float32)
    out = jax.block_until_ready(inner_product_click_predictor(news, user))
    assert out.shape == (b, c)
    assert jnp.allclose(out, reference(news, user), atol=1e-5, rtol=1e-5)

    # 2) Block mode with several grid steps and a partial tail block (B=20 -> bblk=8 -> 3 steps).
    b2 = 20
    news2 = jax.random.normal(k3, (b2, c, d), dtype=jnp.float32)
    user2 = jax.random.normal(k4, (b2, d), dtype=jnp.float32)
    out2 = jax.block_until_ready(
        inner_product_click_predictor(news2, user2, target_block_bytes=2048))
    assert out2.shape == (b2, c)
    assert jnp.allclose(out2, reference(news2, user2), atol=1e-5, rtol=1e-5)

    # 3) Row (MXU) mode with C tiling: padded row = 256*512*4 = 512 KiB, target forces cblk=128.
    b3, c3, d3 = 3, 256, 512
    news3 = jax.random.normal(k5, (b3, c3, d3), dtype=jnp.float32)
    user3 = jax.random.normal(k6, (b3, d3), dtype=jnp.float32)
    out3 = jax.block_until_ready(
        inner_product_click_predictor(news3, user3, target_block_bytes=256 << 10))
    assert out3.shape == (b3, c3)
    assert jnp.allclose(out3, reference(news3, user3), atol=1e-3, rtol=1e-3)

    print("KERNEL_OK")
</pallas_src>

<mosaic_0001>
module attributes {stable_mosaic.version = 11 : i64} {
  func.func @_block_mode_kernel(%arg0: i32, %arg1: memref<2x8x32xf32, #tpu.memory_space<vmem>>, %arg2: memref<2x32xf32, #tpu.memory_space<vmem>>, %arg3: memref<2x8xf32, #tpu.memory_space<vmem>>) attributes {dimension_semantics = [#tpu.dimension_semantics<parallel>], iteration_bounds = array<i64: 1>, scalar_prefetch = 0 : i64, scratch_operands = 0 : i64, tpu.core_type = #tpu.core_type<tc>, window_params = [{transform_indices = @transform_0, window_bounds = array<i64: 2, 8, 32>}, {transform_indices = @transform_1, window_bounds = array<i64: 2, 32>}, {transform_indices = @transform_2, window_bounds = array<i64: 2, 8>}]} {
    %c0 = arith.constant 0 : index
    %c0_0 = arith.constant 0 : index
    %c0_1 = arith.constant 0 : index
    %0 = vector.load %arg1[%c0, %c0_0, %c0_1] : memref<2x8x32xf32, #tpu.memory_space<vmem>>, vector<2x8x32xf32>
    %c0_2 = arith.constant 0 : index
    %c0_3 = arith.constant 0 : index
    %1 = vector.load %arg2[%c0_2, %c0_3] : memref<2x32xf32, #tpu.memory_space<vmem>>, vector<2x32xf32>
    %2 = vector.shape_cast %1 : vector<2x32xf32> to vector<2x1x32xf32>
    %3 = vector.broadcast %2 : vector<2x1x32xf32> to vector<2x8x32xf32>
    %4 = arith.mulf %0, %3 : vector<2x8x32xf32>
    %cst = arith.constant dense<0.000000e+00> : vector<2x8xf32>
    %5 = vector.multi_reduction <add>, %4, %cst [2] : vector<2x8x32xf32> to vector<2x8xf32>
    %c0_4 = arith.constant 0 : index
    %c0_5 = arith.constant 0 : index
    %6 = vector.load %arg3[%c0_4, %c0_5] : memref<2x8xf32, #tpu.memory_space<vmem>>, vector<2x8xf32>
    tpu.vector_store %arg3[%c0_4, %c0_5], %5 {strides = array<i32>} : memref<2x8xf32, #tpu.memory_space<vmem>>, vector<2x8xf32>,
    return
  }
  func.func @transform_0(%arg0: i32) -> (i32, i32, i32) {
    %c0_i32 = arith.constant 0 : i32
    %c0_i32_0 = arith.constant 0 : i32
    %c0_i32_1 = arith.constant 0 : i32
    return %arg0, %c0_i32, %c0_i32_0 : i32, i32, i32
  }
  func.func @transform_1(%arg0: i32) -> (i32, i32) {
    %c0_i32 = arith.constant 0 : i32
    %c0_i32_0 = arith.constant 0 : i32
    return %arg0, %c0_i32 : i32, i32
  }
  func.func @transform_2(%arg0: i32) -> (i32, i32) {
    %c0_i32 = arith.constant 0 : i32
    %c0_i32_0 = arith.constant 0 : i32
    return %arg0, %c0_i32 : i32, i32
  }
}

</mosaic_0001>

<bundles_post_ra>
// kernel: tpu_custom_call.1
= control target key start
LH: loop header
LB: loop body
LE: loop exit
PB: predicated region body
PF: predicated region fallthrough
CT: control target
= control target key end

     0   :  { %7 = vsyncpa [#allocation3], 0  ;;  %s201_s0 = inlined_call_operand.hbm [shape: f32[2,8,32], index: 0, kind: input, shape index: {}]   ;;  %s202_s1 = inlined_call_operand.hbm [shape: f32[2,32], index: 1, kind: input, shape index: {}]   ;;  %s203_s2 = inlined_call_operand.hbm [shape: f32[2,8], index: 2, kind: output, shape index: {}]  }
   0x1   :  { %8 = vsyncpa [#allocation6], 0 }
   0x2   :  { %9 = vsyncpa [#allocation4], 0  ;;  %s14_s11 = sshll.u32 %s201_s0, 4  ;;  %s172_s12 = smov [#allocation2]   ;;  %s15_s11 = int_to_ptr.hbm [resolvable:$true] %s14_s11 }
   0x3   :  { %s16_s13 = sshll.u32 %s172_s12, 4  ;;  %s28_s16 = sshll.u32 %s202_s1, 4  ;;  %s17_s13 = int_to_ptr.vmem [resolvable:$true] %s16_s13  ;;  %s29_s16 = int_to_ptr.hbm [resolvable:$true] %s28_s16 }
   0x4   :  { %s173_s17 = smov 128   ;;  %s174_s18 = smov 8  }
   0x5   :  { %22 = dma.hbm_to_vmem [thread:$0]  %s15_s11, 256, %s17_s13, [#allocation3], %s173_s17, %s173_s17, %s174_s18  }
   0x6   :  { %s175_s19 = smov [#allocation5]  }
   0x7   :  { %s30_s20 = sshll.u32 %s175_s19, 4  ;;  %s31_s20 = int_to_ptr.vmem [resolvable:$true] %s30_s20 }
   0x8   :  { %33 = dma.hbm_to_vmem [thread:$0]  %s29_s16, 32, %s31_s20, [#allocation6]  }
   0x9   :  { %166 = dma.done.wait [#allocation3], 256  }
   0xa   :  { %167 = vsyncadd [#allocation3], 4294967040 }
   0xb   :  { %168 = dma.done.wait [#allocation6], 32  }
   0xc   :  { %169 = vsyncadd [#allocation6], 4294967264  ;;  %v42_v0 = vld [vmem:[#allocation2] sm:$0xff]  ;;  %v44_v1 = vld [vmem:[#allocation5] sm:$0x3]  ;;  %vm53_vm0 = vcmask 261120   ;;  %v62_v11 = vlaneseq }
   0xd   :  { %v47_v2 = vperm.slane %v44_v1, 0  ;;  %v46_v3 = vrot.slane %v44_v1, 1  ;;  %v43_v6 = vld [vmem:[#allocation2 + $0x8] sm:$0xff]  ;;  %s176_s0 = smov [#allocation7]   ;;  %s78_s23 = sshll.u32 %s203_s2, 4  ;;  %vm66_vm1 = vcmask 1041409   ;;  %s79_s23 = int_to_ptr.hbm [resolvable:$true] %s78_s23 }
   0xe   :  { %v63_v12 = vand.u32 127, %v62_v11  ;;  %s76_s1 = sshll.u32 %s176_s0, 4  ;;  %vm69_vm2 = vcmask 58368   ;;  %s77_s1 = int_to_ptr.vmem [resolvable:$true] %s76_s1 }
   0xf   :  { %v51_v4 = vmul.f32 %v47_v2, %v42_v0  ;;  %v48_v5 = vperm.slane %v46_v3, 0 }
  0x11   :  { %v54_v7 = vsel %vm53_vm0, %v51_v4, 0.0  ;;  %v52_v8 = vmul.f32 %v48_v5, %v43_v6 }
  0x12   :  { %55 = vadd.xlane.f32.xlu0 %v54_v7 }
  0x13   :  { %v57_v9 = vsel %vm53_vm0, %v52_v8, 0.0 }
  0x1a   :  { %58 = vadd.xlane.f32.xlu0 %v57_v9 }
  0x85   :  { %v56_v10 = vpop.xlane.xlu0 %55 }
  0x86   :  { %v64_v14 = vperm.slane %v56_v10, %v63_v12 }
  0x8d   :  { %v59_v13 = vpop.xlane.xlu0 %58 }
  0x8e   :  { %v65_v15 = vperm.slane %v59_v13, %v63_v12 }
  0x90   :  { %v67_v16 = vsel %vm66_vm1, %v65_v15, %v64_v14 }
  0x91   :  { %70 = vst.msk [vmem:[#allocation7] sm:$0x3] %vm69_vm2, %v67_v16 }
  0x92   :  { %81 = dma.vmem_to_hbm [thread:$0]  %s77_s1, 32, %s79_s23, [#allocation4]  }
  0x93   :  { %170 = dma.done.wait [#allocation4], 32  }
  0x94   :  { %171 = vsyncadd [#allocation4], 4294967264 }
  0x95   :  { %86 = vsyncpa [#allocation3], 1 }
  0x96   :  { %87 = vsyncpa [#allocation6], 1 }
  0x97   :  { %88 = vsyncpa [#allocation4], 1 }

</bundles_post_ra>
